<compile_context>
chip_gen: v5e
topology: v5e:2x2
jax: 0.10.0
libtpu: 0.0.40
codegen_flags: <defaults>
</compile_context>

<pallas_src>
import numpy as np
import jax
import jax.numpy as jnp
from jax import lax
from jax.experimental import pallas as pl
from jax.experimental.pallas import tpu as pltpu


def _round_up(v, m):
    return ((v + m - 1) // m) * m


def _pick_n_tile(N, K, c2pad, B, budget_bytes=40 * 1024 * 1024):
    """Largest divisor tile of the patch axis whose double-buffered working set
    fits the per-step VMEM budget (v7x-safe).  Tiles must be == N or a multiple
    of 8 (the (8,128) BlockSpec rule)."""
    def step_bytes(t):
        # bf16 patches block + f32 output block, double-buffered.
        return 2 * (t * K * 2) + 2 * (t * c2pad * 4)
    divs = [d for d in range(1, N + 1) if N % d == 0 and (d == N or d % 8 == 0)]
    fitting = [d for d in divs if step_bytes(d) <= budget_bytes]
    if fitting:
        tN = max(fitting)
    else:
        tN = min(divs)  # TODO(synk): pad N instead of falling back to a tiny/huge tile.
    # v7x has 2 TensorCores: keep >= 2 parallel grid steps when possible.
    if B * (N // tN) < 2:
        smaller = [d for d in fitting if d < N] or [d for d in divs if d < N]
        if smaller:
            tN = max(smaller)
    return tN, N // tN


def im2col_nchw(x, P, S, pad):
    """x: [B, C, H, W] -> patches [B, Hp*Wp, C*P*P] (feature order (C, Ph, Pw))."""
    B, C, H, W = x.shape
    if pad:
        x = jnp.pad(x, ((0, 0), (0, 0), (pad, pad), (pad, pad)))
        H += 2 * pad
        W += 2 * pad
    Hp = (H - P) // S + 1
    Wp = (W - P) // S + 1
    if S == P and pad == 0 and H % P == 0 and W % P == 0:
        # Non-overlapping patch embed: pure reshape/transpose, no gather.
        g = x.reshape(B, C, Hp, P, Wp, P).transpose(0, 2, 4, 1, 3, 5)
    else:
        # TODO(synk): overlapping patches use an advanced-indexing gather; an
        # in-kernel strided DMA would avoid this extra HBM pass.
        ih = (jnp.arange(Hp) * S)[:, None] + jnp.arange(P)[None, :]     # [Hp, P]
        iw = (jnp.arange(Wp) * S)[:, None] + jnp.arange(P)[None, :]     # [Wp, P]
        g = x[:, :, ih[:, :, None, None], iw[None, None, :, :]]         # [B,C,Hp,P,Wp,P]
        g = g.transpose(0, 2, 4, 1, 3, 5)
    return g.reshape(B, Hp * Wp, C * P * P), Hp, Wp


def moe_experts_pallas(x, expert_ids, coef, conv_w, conv_b, ln_w, ln_b, *, P, S, pad):
    """Fused routed-expert patch-embed conv + ConvLayerNorm + gated combine.

    expert_ids: [B, ksel] int32 expert indices (last slot = shared expert, id E).
    coef:       [B, ksel] f32 gate coefficients (last slot = 1.0).
    conv_w:     [E+1, C2, C1, P, P]   (index E = shared expert)
    conv_b / ln_w / ln_b: [E+1, C2]
    Returns NCHW [B, C2, Hp, Wp] (PatchEmbedParallel output layout).
    """
    B = x.shape[0]
    EA, C2 = conv_b.shape
    ksel = expert_ids.shape[1]

    patches, Hp, Wp = im2col_nchw(x, P, S, pad)                      # [B, N, K]
    _, N, K = patches.shape

    # Lane-dense layout: pad the output-channel dim to a multiple of 128 so every
    # store is an unmasked full-lane vst. Padded lanes stay exactly zero.
    C2pad = _round_up(max(C2, 128), 128)

    # bf16 matmul operands (f32 accumulation on the MXU); LN / combine math f32.
    patches = patches.astype(jnp.bfloat16)
    W_im2col = conv_w.reshape(EA, C2, K).transpose(0, 2, 1)          # [EA, K, C2]
    W_all = jnp.zeros((EA, K, C2pad), jnp.float32).at[:, :, :C2].set(W_im2col)
    W_all = W_all.astype(jnp.bfloat16)

    # Per-(batch, slot) params with the gate coefficient folded into the LN affine
    # (conv bias is pre-LN, so NOT gate-scaled). Tiny: [B, ksel, 3, C2pad].
    bias_sel = conv_b[expert_ids]                                    # [B, ksel, C2]
    lnw_sel = ln_w[expert_ids] * coef[..., None]
    lnb_sel = ln_b[expert_ids] * coef[..., None]
    params = jnp.stack([bias_sel, lnw_sel, lnb_sel], axis=2)         # [B, ksel, 3, C2]
    params = jnp.zeros((B, ksel, 3, C2pad), jnp.float32).at[..., :C2].set(params)

    tN, n_tiles = _pick_n_tile(N, K, C2pad, B)

    # Explicit VMEM budget: double-buffered blocks + resident weights/params.
    vmem_need = (2 * tN * K * 2 + 2 * tN * C2pad * 4
                 + 2 * EA * K * C2pad * 2 + 2 * ksel * 8 * C2pad * 4)
    vmem_limit = int(min(max(2 * vmem_need, 32 * 1024 * 1024), 64 * 1024 * 1024))

    inv_c2 = 1.0 / float(C2)
    eps = 1e-6

    def kernel(idx_ref, patches_ref, w_ref, params_ref, out_ref):
        b = pl.program_id(0)
        p = patches_ref[0]                                   # (tN, K) bf16
        acc = jnp.zeros((tN, C2pad), jnp.float32)
        # Routed slots (k experts + shared) handled in-kernel: all expert weights
        # stay VMEM-resident and are selected with the scalar-prefetched ids, so
        # there is no expert grid axis and no per-expert weight DMA.
        for s in range(ksel):                                # static unroll (ksel small)
            e = idx_ref[b, s]
            w = w_ref[e]                                     # (K, C2pad) bf16, dyn. index
            y = jnp.dot(p, w, preferred_element_type=jnp.float32)   # MXU, f32 accumulate
            prm = params_ref[0, s]                           # (3, C2pad) f32
            y = y + prm[0:1, :]                              # conv bias (pre-LN)
            # Channel LayerNorm with the true-C2 divisor; zero-padded lanes add 0
            # to both sums, so no lane mask is needed.
            u = jnp.sum(y, axis=-1, keepdims=True) * inv_c2
            var = jnp.sum(y * y, axis=-1, keepdims=True) * inv_c2 - u * u
            yn = (y - u) * lax.rsqrt(var + eps)              # rsqrt -> EUP slot
            # Gate coef pre-folded into lnw'/lnb' (both zero on padded lanes).
            acc = acc + yn * prm[1:2, :] + prm[2:3, :]
        out_ref[0] = acc                                     # single lane-dense store

    out = pl.pallas_call(
        kernel,
        out_shape=jax.ShapeDtypeStruct((B, N, C2pad), jnp.float32),
        grid_spec=pltpu.PrefetchScalarGridSpec(
            num_scalar_prefetch=1,                           # expert_ids -> SMEM
            grid=(B, n_tiles),
            in_specs=[
                pl.BlockSpec((1, tN, K), lambda b, t, idx: (b, t, 0)),            # patches
                pl.BlockSpec((EA, K, C2pad), lambda b, t, idx: (0, 0, 0)),        # all expert W (resident)
                pl.BlockSpec((1, ksel, 3, C2pad), lambda b, t, idx: (b, 0, 0, 0)),  # bias / lnw' / lnb'
            ],
            out_specs=pl.BlockSpec((1, tN, C2pad), lambda b, t, idx: (b, t, 0)),
        ),
        compiler_params=pltpu.CompilerParams(
            dimension_semantics=("parallel", "parallel"),
            vmem_limit_bytes=vmem_limit),
    )(expert_ids, patches, W_all, params)

    # Drop the zero-padded lanes and return NCHW (module's output layout).
    # TODO(synk): a consumer that accepts NHWC could skip this transpose pass.
    out = out[..., :C2].reshape(B, Hp, Wp, C2)
    return out.transpose(0, 3, 1, 2)


def cv_squared(v):
    eps = 1e-10
    v = v.astype(jnp.float32)
    if v.shape[0] == 1:
        return jnp.float32(0.0)
    return jnp.var(v, ddof=1) / (jnp.mean(v) ** 2 + eps)     # torch .var() is unbiased


def noisy_top_k_gating(x, w_gate, num_experts, k):
    """Eval-mode gating (self.training == False): no Gaussian noise is added."""
    # TODO(synk): training-mode noisy gating (randn noise + Normal.cdf load) not reproduced.
    x_mean = x.mean(axis=-1).mean(axis=1)                    # [B, C, H, W] -> [B, H]
    clean_logits = x_mean @ w_gate                           # [B, E]
    logits = jax.nn.softmax(clean_logits, axis=1)
    m = min(k + 1, num_experts)
    top_logits, top_indices = lax.top_k(logits, m)
    top_k_logits = top_logits[:, :k]
    top_k_indices = top_indices[:, :k]
    top_k_gates = top_k_logits / (top_k_logits.sum(axis=1, keepdims=True) + 1e-6)
    B = logits.shape[0]
    gates = jnp.zeros_like(logits).at[
        jnp.arange(B)[:, None], top_k_indices].set(top_k_gates)
    load = (gates > 0).sum(axis=0).astype(jnp.float32)
    return gates, load, top_k_indices, top_k_gates


if __name__ == "__main__":
    # Module config: MoE_lora(c1, c2, patch_size, stride, padding, num_experts, width)
    B, C1, C2 = 2, 4, 32
    P, S, pad = 4, 4, 0
    H = W = 16
    E, k = 4, 2
    width = H             # gating averages over (W, C1) -> [B, H], so width == H
    loss_coef = 0.01

    key = jax.random.PRNGKey(0)
    k_x1, k_x2, k_w, k_b, k_g = jax.random.split(key, 5)

    xs = [jax.random.normal(k_x1, (B, C1, H, W), jnp.float32),
          jax.random.normal(k_x2, (B, C1, H, W), jnp.float32)]

    # Expert parameters: indices 0..E-1 are routed experts, index E is the shared expert.
    conv_w = 0.05 * jax.random.normal(k_w, (E + 1, C2, C1, P, P), jnp.float32)
    conv_b = 0.05 * jax.random.normal(k_b, (E + 1, C2), jnp.float32)
    ln_w = jnp.ones((E + 1, C2), jnp.float32)     # ConvLayerNorm init: ones
    ln_b = jnp.zeros((E + 1, C2), jnp.float32)    # ConvLayerNorm init: zeros
    # Module inits w_gate to zeros; small random values here so routing is non-trivial.
    w_gate = 0.1 * jax.random.normal(k_g, (width, E), jnp.float32)

    moe_fn = jax.jit(moe_experts_pallas, static_argnames=("P", "S", "pad"))

    total_loss = jnp.float32(0.0)
    final_outputs = []
    for x in xs:
        gates, load, top_k_indices, top_k_gates = noisy_top_k_gating(x, w_gate, E, k)
        importance = gates.sum(axis=0)
        loss = (cv_squared(importance) + cv_squared(load)) * loss_coef
        total_loss = total_loss + loss

        # Per-batch routed expert ids + shared expert slot (index E, coefficient 1.0).
        expert_ids = jnp.concatenate(
            [top_k_indices.astype(jnp.int32), jnp.full((B, 1), E, jnp.int32)], axis=1)
        coef = jnp.concatenate(
            [top_k_gates.astype(jnp.float32), jnp.ones((B, 1), jnp.float32)], axis=1)

        out = moe_fn(x, expert_ids, coef, conv_w, conv_b, ln_w, ln_b, P=P, S=S, pad=pad)
        final_outputs.append(out)

    final_outputs = [jax.block_until_ready(o) for o in final_outputs]
    total_loss = jax.block_until_ready(total_loss)

    # -----------------------------------------------------------------------
    # Pure-JAX reference (dense dispatch/combine + shared expert). Matmul
    # operands are bf16-rounded to match the kernel's MXU precision, so this
    # validates kernel/reference consistency at MXU precision.
    # -----------------------------------------------------------------------
    def expert_ref(xq, wq, b, lnw, lnb):
        y = lax.conv_general_dilated(
            xq, wq, window_strides=(S, S), padding=[(pad, pad), (pad, pad)],
            dimension_numbers=("NCHW", "OIHW", "NCHW"))
        y = y + b[None, :, None, None]
        u = y.mean(axis=1, keepdims=True)
        s = ((y - u) ** 2).mean(axis=1, keepdims=True)
        yn = (y - u) / jnp.sqrt(s + 1e-6)
        return lnw[None, :, None, None] * yn + lnb[None, :, None, None]

    conv_w_q = conv_w.astype(jnp.bfloat16).astype(jnp.float32)
    for x, out in zip(xs, final_outputs):
        gates, *_ = noisy_top_k_gating(x, w_gate, E, k)
        xq = x.astype(jnp.bfloat16).astype(jnp.float32)
        ref = expert_ref(xq, conv_w_q[E], conv_b[E], ln_w[E], ln_b[E])
        for e in range(E):
            ref = ref + gates[:, e][:, None, None, None] * expert_ref(
                xq, conv_w_q[e], conv_b[e], ln_w[e], ln_b[e])
        err = float(jnp.max(jnp.abs(out - ref)))
        if not np.isfinite(err) or err > 2e-3:
            raise AssertionError(f"Pallas output mismatch vs reference, max abs err={err}")

    print("KERNEL_OK")
</pallas_src>

<mosaic_0001>
module attributes {stable_mosaic.version = 11 : i64} {
  func.func @kernel(%arg0: i32, %arg1: i32, %arg2: memref<2x3xi32, #tpu.memory_space<smem>>, %arg3: memref<1x16x64xbf16, #tpu.memory_space<vmem>>, %arg4: memref<5x64x128xbf16, #tpu.memory_space<vmem>>, %arg5: memref<1x3x3x128xf32, #tpu.memory_space<vmem>>, %arg6: memref<1x16x128xf32, #tpu.memory_space<vmem>>) attributes {dimension_semantics = [#tpu.dimension_semantics<parallel>, #tpu.dimension_semantics<parallel>], iteration_bounds = array<i64: 2, 1>, scalar_prefetch = 1 : i64, scratch_operands = 0 : i64, tpu.core_type = #tpu.core_type<tc>, window_params = [{transform_indices = @transform_0, window_bounds = array<i64: 1, 16, 64>}, {pipeline_mode = #tpu.pipeline_mode<synchronous>, transform_indices = @transform_1, window_bounds = array<i64: 5, 64, 128>}, {transform_indices = @transform_2, window_bounds = array<i64: 1, 3, 3, 128>}, {transform_indices = @transform_3, window_bounds = array<i64: 1, 16, 128>}]} {
    %c0 = arith.constant 0 : index
    %c0_0 = arith.constant 0 : index
    %c0_1 = arith.constant 0 : index
    %0 = vector.load %arg3[%c0, %c0_0, %c0_1] : memref<1x16x64xbf16, #tpu.memory_space<vmem>>, vector<1x16x64xbf16>
    %1 = vector.shape_cast %0 : vector<1x16x64xbf16> to vector<16x64xbf16>
    %cst = arith.constant 0.000000e+00 : f32
    %2 = vector.broadcast %cst : f32 to vector<16x128xf32>
    %3 = arith.index_cast %arg0 : i32 to index
    %c0_2 = arith.constant 0 : index
    %4 = memref.load %arg2[%3, %c0_2] : memref<2x3xi32, #tpu.memory_space<smem>>
    %5 = arith.index_cast %4 : i32 to index
    %c0_3 = arith.constant 0 : index
    %c0_4 = arith.constant 0 : index
    %6 = vector.load %arg4[%5, %c0_3, %c0_4] : memref<5x64x128xbf16, #tpu.memory_space<vmem>>, vector<1x64x128xbf16>
    %7 = vector.shape_cast %6 : vector<1x64x128xbf16> to vector<64x128xbf16>
    %cst_5 = arith.constant dense<0.000000e+00> : vector<16x128xf32>
    %8 = tpu.matmul %1, %7, %cst_5 {dimension_numbers = #tpu.dot_dimension_numbers<[1], [0], [0], [1], [0, 0, 1, 1], [], []>} : vector<16x64xbf16>, vector<64x128xbf16>, vector<16x128xf32> -> vector<16x128xf32>
    %c0_6 = arith.constant 0 : index
    %c0_7 = arith.constant 0 : index
    %c0_8 = arith.constant 0 : index
    %c0_9 = arith.constant 0 : index
    %9 = vector.load %arg5[%c0_6, %c0_7, %c0_8, %c0_9] : memref<1x3x3x128xf32, #tpu.memory_space<vmem>>, vector<1x1x3x128xf32>
    %10 = vector.shape_cast %9 : vector<1x1x3x128xf32> to vector<3x128xf32>
    %11 = vector.extract_strided_slice %10 {offsets = [0, 0], sizes = [1, 128], strides = [1, 1]} : vector<3x128xf32> to vector<1x128xf32>
    %12 = vector.broadcast %11 : vector<1x128xf32> to vector<16x128xf32>
    %13 = arith.addf %8, %12 : vector<16x128xf32>
    %cst_10 = arith.constant dense<0.000000e+00> : vector<16xf32>
    %14 = vector.multi_reduction <add>, %13, %cst_10 [1] : vector<16x128xf32> to vector<16xf32>
    %15 = vector.shape_cast %14 : vector<16xf32> to vector<16x1xf32>
    %cst_11 = arith.constant 3.125000e-02 : f32
    %16 = vector.broadcast %cst_11 : f32 to vector<16x1xf32>
    %17 = arith.mulf %15, %16 : vector<16x1xf32>
    %18 = arith.mulf %13, %13 : vector<16x128xf32>
    %cst_12 = arith.constant dense<0.000000e+00> : vector<16xf32>
    %19 = vector.multi_reduction <add>, %18, %cst_12 [1] : vector<16x128xf32> to vector<16xf32>
    %20 = vector.shape_cast %19 : vector<16xf32> to vector<16x1xf32>
    %cst_13 = arith.constant 3.125000e-02 : f32
    %21 = vector.broadcast %cst_13 : f32 to vector<16x1xf32>
    %22 = arith.mulf %20, %21 : vector<16x1xf32>
    %23 = arith.mulf %17, %17 : vector<16x1xf32>
    %24 = arith.subf %22, %23 : vector<16x1xf32>
    %25 = vector.broadcast %17 : vector<16x1xf32> to vector<16x128xf32>
    %26 = arith.subf %13, %25 : vector<16x128xf32>
    %cst_14 = arith.constant 9.99999997E-7 : f32
    %27 = vector.broadcast %cst_14 : f32 to vector<16x1xf32>
    %28 = arith.addf %24, %27 : vector<16x1xf32>
    %29 = math.rsqrt %28 : vector<16x1xf32>
    %30 = vector.broadcast %29 : vector<16x1xf32> to vector<16x128xf32>
    %31 = arith.mulf %26, %30 : vector<16x128xf32>
    %32 = vector.extract_strided_slice %10 {offsets = [1, 0], sizes = [1, 128], strides = [1, 1]} : vector<3x128xf32> to vector<1x128xf32>
    %33 = vector.broadcast %32 : vector<1x128xf32> to vector<16x128xf32>
    %34 = arith.mulf %31, %33 : vector<16x128xf32>
    %35 = arith.addf %2, %34 : vector<16x128xf32>
    %36 = vector.extract_strided_slice %10 {offsets = [2, 0], sizes = [1, 128], strides = [1, 1]} : vector<3x128xf32> to vector<1x128xf32>
    %37 = vector.broadcast %36 : vector<1x128xf32> to vector<16x128xf32>
    %38 = arith.addf %35, %37 : vector<16x128xf32>
    %39 = arith.index_cast %arg0 : i32 to index
    %c1 = arith.constant 1 : index
    %40 = memref.load %arg2[%39, %c1] : memref<2x3xi32, #tpu.memory_space<smem>>
    %41 = arith.index_cast %40 : i32 to index
    %c0_15 = arith.constant 0 : index
    %c0_16 = arith.constant 0 : index
    %42 = vector.load %arg4[%41, %c0_15, %c0_16] : memref<5x64x128xbf16, #tpu.memory_space<vmem>>, vector<1x64x128xbf16>
    %43 = vector.shape_cast %42 : vector<1x64x128xbf16> to vector<64x128xbf16>
    %cst_17 = arith.constant dense<0.000000e+00> : vector<16x128xf32>
    %44 = tpu.matmul %1, %43, %cst_17 {dimension_numbers = #tpu.dot_dimension_numbers<[1], [0], [0], [1], [0, 0, 1, 1], [], []>} : vector<16x64xbf16>, vector<64x128xbf16>, vector<16x128xf32> -> vector<16x128xf32>
    %c0_18 = arith.constant 0 : index
    %c1_19 = arith.constant 1 : index
    %c0_20 = arith.constant 0 : index
    %c0_21 = arith.constant 0 : index
    %45 = vector.load %arg5[%c0_18, %c1_19, %c0_20, %c0_21] : memref<1x3x3x128xf32, #tpu.memory_space<vmem>>, vector<1x1x3x128xf32>
    %46 = vector.shape_cast %45 : vector<1x1x3x128xf32> to vector<3x128xf32>
    %47 = vector.extract_strided_slice %46 {offsets = [0, 0], sizes = [1, 128], strides = [1, 1]} : vector<3x128xf32> to vector<1x128xf32>
    %48 = vector.broadcast %47 : vector<1x128xf32> to vector<16x128xf32>
    %49 = arith.addf %44, %48 : vector<16x128xf32>
    %cst_22 = arith.constant dense<0.000000e+00> : vector<16xf32>
    %50 = vector.multi_reduction <add>, %49, %cst_22 [1] : vector<16x128xf32> to vector<16xf32>
    %51 = vector.shape_cast %50 : vector<16xf32> to vector<16x1xf32>
    %cst_23 = arith.constant 3.125000e-02 : f32
    %52 = vector.broadcast %cst_23 : f32 to vector<16x1xf32>
    %53 = arith.mulf %51, %52 : vector<16x1xf32>
    %54 = arith.mulf %49, %49 : vector<16x128xf32>
    %cst_24 = arith.constant dense<0.000000e+00> : vector<16xf32>
    %55 = vector.multi_reduction <add>, %54, %cst_24 [1] : vector<16x128xf32> to vector<16xf32>
    %56 = vector.shape_cast %55 : vector<16xf32> to vector<16x1xf32>
    %cst_25 = arith.constant 3.125000e-02 : f32
    %57 = vector.broadcast %cst_25 : f32 to vector<16x1xf32>
    %58 = arith.mulf %56, %57 : vector<16x1xf32>
    %59 = arith.mulf %53, %53 : vector<16x1xf32>
    %60 = arith.subf %58, %59 : vector<16x1xf32>
    %61 = vector.broadcast %53 : vector<16x1xf32> to vector<16x128xf32>
    %62 = arith.subf %49, %61 : vector<16x128xf32>
    %cst_26 = arith.constant 9.99999997E-7 : f32
    %63 = vector.broadcast %cst_26 : f32 to vector<16x1xf32>
    %64 = arith.addf %60, %63 : vector<16x1xf32>
    %65 = math.rsqrt %64 : vector<16x1xf32>
    %66 = vector.broadcast %65 : vector<16x1xf32> to vector<16x128xf32>
    %67 = arith.mulf %62, %66 : vector<16x128xf32>
    %68 = vector.extract_strided_slice %46 {offsets = [1, 0], sizes = [1, 128], strides = [1, 1]} : vector<3x128xf32> to vector<1x128xf32>
    %69 = vector.broadcast %68 : vector<1x128xf32> to vector<16x128xf32>
    %70 = arith.mulf %67, %69 : vector<16x128xf32>
    %71 = arith.addf %38, %70 : vector<16x128xf32>
    %72 = vector.extract_strided_slice %46 {offsets = [2, 0], sizes = [1, 128], strides = [1, 1]} : vector<3x128xf32> to vector<1x128xf32>
    %73 = vector.broadcast %72 : vector<1x128xf32> to vector<16x128xf32>
    %74 = arith.addf %71, %73 : vector<16x128xf32>
    %75 = arith.index_cast %arg0 : i32 to index
    %c2 = arith.constant 2 : index
    %76 = memref.load %arg2[%75, %c2] : memref<2x3xi32, #tpu.memory_space<smem>>
    %77 = arith.index_cast %76 : i32 to index
    %c0_27 = arith.constant 0 : index
    %c0_28 = arith.constant 0 : index
    %78 = vector.load %arg4[%77, %c0_27, %c0_28] : memref<5x64x128xbf16, #tpu.memory_space<vmem>>, vector<1x64x128xbf16>
    %79 = vector.shape_cast %78 : vector<1x64x128xbf16> to vector<64x128xbf16>
    %cst_29 = arith.constant dense<0.000000e+00> : vector<16x128xf32>
    %80 = tpu.matmul %1, %79, %cst_29 {dimension_numbers = #tpu.dot_dimension_numbers<[1], [0], [0], [1], [0, 0, 1, 1], [], []>} : vector<16x64xbf16>, vector<64x128xbf16>, vector<16x128xf32> -> vector<16x128xf32>
    %c0_30 = arith.constant 0 : index
    %c2_31 = arith.constant 2 : index
    %c0_32 = arith.constant 0 : index
    %c0_33 = arith.constant 0 : index
    %81 = vector.load %arg5[%c0_30, %c2_31, %c0_32, %c0_33] : memref<1x3x3x128xf32, #tpu.memory_space<vmem>>, vector<1x1x3x128xf32>
    %82 = vector.shape_cast %81 : vector<1x1x3x128xf32> to vector<3x128xf32>
    %83 = vector.extract_strided_slice %82 {offsets = [0, 0], sizes = [1, 128], strides = [1, 1]} : vector<3x128xf32> to vector<1x128xf32>
    %84 = vector.broadcast %83 : vector<1x128xf32> to vector<16x128xf32>
    %85 = arith.addf %80, %84 : vector<16x128xf32>
    %cst_34 = arith.constant dense<0.000000e+00> : vector<16xf32>
    %86 = vector.multi_reduction <add>, %85, %cst_34 [1] : vector<16x128xf32> to vector<16xf32>
    %87 = vector.shape_cast %86 : vector<16xf32> to vector<16x1xf32>
    %cst_35 = arith.constant 3.125000e-02 : f32
    %88 = vector.broadcast %cst_35 : f32 to vector<16x1xf32>
    %89 = arith.mulf %87, %88 : vector<16x1xf32>
    %90 = arith.mulf %85, %85 : vector<16x128xf32>
    %cst_36 = arith.constant dense<0.000000e+00> : vector<16xf32>
    %91 = vector.multi_reduction <add>, %90, %cst_36 [1] : vector<16x128xf32> to vector<16xf32>
    %92 = vector.shape_cast %91 : vector<16xf32> to vector<16x1xf32>
    %cst_37 = arith.constant 3.125000e-02 : f32
    %93 = vector.broadcast %cst_37 : f32 to vector<16x1xf32>
    %94 = arith.mulf %92, %93 : vector<16x1xf32>
    %95 = arith.mulf %89, %89 : vector<16x1xf32>
    %96 = arith.subf %94, %95 : vector<16x1xf32>
    %97 = vector.broadcast %89 : vector<16x1xf32> to vector<16x128xf32>
    %98 = arith.subf %85, %97 : vector<16x128xf32>
    %cst_38 = arith.constant 9.99999997E-7 : f32
    %99 = vector.broadcast %cst_38 : f32 to vector<16x1xf32>
    %100 = arith.addf %96, %99 : vector<16x1xf32>
    %101 = math.rsqrt %100 : vector<16x1xf32>
    %102 = vector.broadcast %101 : vector<16x1xf32> to vector<16x128xf32>
    %103 = arith.mulf %98, %102 : vector<16x128xf32>
    %104 = vector.extract_strided_slice %82 {offsets = [1, 0], sizes = [1, 128], strides = [1, 1]} : vector<3x128xf32> to vector<1x128xf32>
    %105 = vector.broadcast %104 : vector<1x128xf32> to vector<16x128xf32>
    %106 = arith.mulf %103, %105 : vector<16x128xf32>
    %107 = arith.addf %74, %106 : vector<16x128xf32>
    %108 = vector.extract_strided_slice %82 {offsets = [2, 0], sizes = [1, 128], strides = [1, 1]} : vector<3x128xf32> to vector<1x128xf32>
    %109 = vector.broadcast %108 : vector<1x128xf32> to vector<16x128xf32>
    %110 = arith.addf %107, %109 : vector<16x128xf32>
    %c0_39 = arith.constant 0 : index
    %c0_40 = arith.constant 0 : index
    %c0_41 = arith.constant 0 : index
    %111 = vector.load %arg6[%c0_39, %c0_40, %c0_41] : memref<1x16x128xf32, #tpu.memory_space<vmem>>, vector<1x16x128xf32>
    %112 = vector.shape_cast %111 : vector<1x16x128xf32> to vector<16x128xf32>
    %113 = vector.shape_cast %110 : vector<16x128xf32> to vector<1x16x128xf32>
    tpu.vector_store %arg6[%c0_39, %c0_40, %c0_41], %113 {strides = array<i32>} : memref<1x16x128xf32, #tpu.memory_space<vmem>>, vector<1x16x128xf32>,
    return
  }
  func.func @transform_0(%arg0: i32, %arg1: i32, %arg2: memref<2x3xi32, #tpu.memory_space<smem>>) -> (i32, i32, i32) {
    %c0_i32 = arith.constant 0 : i32
    %c0_i32_0 = arith.constant 0 : i32
    return %arg0, %arg1, %c0_i32 : i32, i32, i32
  }
  func.func @transform_1(%arg0: i32, %arg1: i32, %arg2: memref<2x3xi32, #tpu.memory_space<smem>>) -> (i32, i32, i32) {
    %c0_i32 = arith.constant 0 : i32
    %c0_i32_0 = arith.constant 0 : i32
    %c0_i32_1 = arith.constant 0 : i32
    %c0_i32_2 = arith.constant 0 : i32
    return %c0_i32, %c0_i32_0, %c0_i32_1 : i32, i32, i32
  }
  func.func @transform_2(%arg0: i32, %arg1: i32, %arg2: memref<2x3xi32, #tpu.memory_space<smem>>) -> (i32, i32, i32, i32) {
    %c0_i32 = arith.constant 0 : i32
    %c0_i32_0 = arith.constant 0 : i32
    %c0_i32_1 = arith.constant 0 : i32
    %c0_i32_2 = arith.constant 0 : i32
    return %arg0, %c0_i32, %c0_i32_0, %c0_i32_1 : i32, i32, i32, i32
  }
  func.func @transform_3(%arg0: i32, %arg1: i32, %arg2: memref<2x3xi32, #tpu.memory_space<smem>>) -> (i32, i32, i32) {
    %c0_i32 = arith.constant 0 : i32
    %c0_i32_0 = arith.constant 0 : i32
    return %arg0, %arg1, %c0_i32 : i32, i32, i32
  }
}

</mosaic_0001>

<bundles_post_ra>
// kernel: moe_experts_pallas.1
= control target key start
LH: loop header
LB: loop body
LE: loop exit
PB: predicated region body
PF: predicated region fallthrough
CT: control target
= control target key end

     0   :  { %s936_s18 = smov [#allocation3]   ;;  %s1199_s0 = inlined_call_operand.vmem [shape: s32[2,3], index: 0, kind: input, shape index: {}]   ;;  %s1200_s1 = inlined_call_operand.vmem [shape: bf16[2,16,64], index: 1, kind: input, shape index: {}]   ;;  %s1201_s2 = inlined_call_operand.vmem [shape: bf16[5,64,128], index: 2, kind: input, shape index: {}]   ;;  %s1202_s3 = inlined_call_operand.vmem [shape: f32[2,3,3,128], index: 3, kind: input, shape index: {}]   ;;  %s1203_s4 = inlined_call_operand.hbm [shape: f32[2,16,128], index: 4, kind: output, shape index: {}]  }
   0x1   :  { %s10_s17 = sshll.u32 %s1199_s0, 4  ;;  %s11_s17 = int_to_ptr.vmem [resolvable:$true] %s10_s17 }
   0x2   :  { %13 = dma.vmem_to_smem %s11_s17, 32, %s936_s18, [#allocation2] }
   0x3   :  { %906 = dma.done.wait [#allocation2], 32 }
   0x4   :  { %907 = vsyncadd [#allocation2], 4294967264 }
   0x5   :  { %16 = sfence }
   0x6   :  { %17 = vsyncpa [#allocation5], 0 }
   0x7   :  { %19 = vsyncpa [#allocation5 + $0x1], 0  ;;  %s967_s19 = smov 0   ;;  %s969_s20 = smov 0  }
   0x8   :  { %s971_s21 = smov 0   ;;  %s973_s22 = smov 0  }
   0x9   :  { %s975_s23 = smov 0   ;;  %s977_s24 = smov 0  }
   0xa LB: > { %s675_s0 = sadd.s32 4294967295, %s934_s24   ;;  %s676_s25 = sadd.s32 4294967294, %s934_s24   ;;  %s934_s24 = sphi %s977_s24, %s25_s24   ;;  %s930_s23 = sphi %s975_s23, %s1214_s23   ;;  %s926_s22 = sphi %s973_s22, %s1213_s22   ;;  %s922_s21 = sphi %s971_s21, %s1212_s21   ;;  %s918_s20 = sphi %s969_s20, %s1211_s20   ;;  %s914_s19 = sphi %s967_s19, %s1210_s19  }
   0xb   : > { %s37_s26 = sadd.s32 1, %s930_s23  ;;  %s121_s27 = sadd.s32 1, %s922_s21 }
   0xc   : > { %p39_p0 = scmp.ge.s32.totalorder %s37_s26, 2  ;;  %p131_p1 = scmp.ne.s32.totalorder %s922_s21, %s918_s20 }
   0xd   : > { %p132_p2 = scmp.eq.s32.totalorder %s675_s0, 1  ;;  %p137_p3 = scmp.ne.s32.totalorder %s918_s20, %s914_s19 }
   0xe   : > { %s1216_s26 = smov (%p39_p0, %s37_s26), 0  ;;  %p138_p5 = scmp.eq.s32.totalorder %s676_s25, 1 }
   0xf   : > { %p1007_p4 = por %p132_p2, %p131_p1  ;;  %s116_s29 = ssub.s32 %s930_s23, %s1216_s26 }
  0x10   : > { %p679_p6 = scmp.ge.s32.totalorder %s934_s24, 1  ;;  %p119_p7 = scmp.eq.s32.totalorder %s116_s29, 0 }
  0x11   : > { %p1014_p8 = por %p138_p5, %p137_p3  ;;  %p180_p9 = scmp.lt.s32.totalorder %s934_s24, 3 }
  0x12   : > { %s1020_s5 = scalar_select %p119_p7, %s922_s21, %s121_s27  }
  0x13   : > { %p181_p10 = pnand %p679_p6, %p180_p9 }
  0x14   : > { %s684_s6 = sshll.u32 (!%p181_p10), %s926_s22, 7  ;;  %p214_p11 = scmp.lt.s32.totalorder (!%p181_p10), %s926_s22, 1 }
  0x15   : > { %184 = sbr.rel (%p181_p10) target bundleno = 352 (0x160), region = 32  ;;  %s233_s7 = sld [smem:[#allocation3 + %s684_s6]] (!%p181_p10) }
  0x16   : > { %s346_s8 = sadd.s32 (!%p181_p10), 1, %s684_s6  ;;  %s452_s10 = sadd.s32 (!%p181_p10), 2, %s684_s6 }
  0x17   : > { %s347_s9 = sld [smem:[#allocation3 + %s346_s8]] (!%p181_p10)  ;;  %s770_s18 = sshll.u32 (!%p181_p10), %s926_s22, 4 }
  0x18   : > { %s453_s11 = sld [smem:[#allocation3 + %s452_s10]] (!%p181_p10) }
  0x1a   : > { %vm276_vm0 = vcmask 523264  }
  0x1b   : > { %s755_s12 = sshll.u32 %s233_s7, 5 }
  0x1c   : > { %s236_s15 = scalar_lea.vmem %s1201_s2, %s755_s12 }
  0x1d   : > { %s760_s16 = sshll.u32 %s347_s9, 5  ;;  %v759_v0 = vld [vmem:[%s236_s15 + $0x18] sm:$0xff]  ;;  %v758_v3 = vld [vmem:[%s236_s15 + $0x10] sm:$0xff]  ;;  %v757_v6 = vld [vmem:[%s236_s15 + $0x8] sm:$0xff] }
  0x1e   : > { %s350_s0 = scalar_lea.vmem %s1201_s2, %s760_s16  ;;  %s765_s25 = sshll.u32 %s453_s11, 5  ;;  %284 = vmatpush.bf16.msra.mxu0 %v759_v0  ;;  %v756_v9 = vld [vmem:[%s236_s15] sm:$0xff] }
  0x1f   : > { %v764_v1 = vld [vmem:[%s350_s0 + $0x18] sm:$0xff]  ;;  %s456_s6 = scalar_lea.vmem %s1201_s2, %s765_s25  ;;  %v763_v4 = vld [vmem:[%s350_s0 + $0x10] sm:$0xff]  ;;  %v762_v7 = vld [vmem:[%s350_s0 + $0x8] sm:$0xff]  ;;  %s210_s16 = sand.u32 1, %s918_s20  }
  0x20   : > { %v769_v2 = vld [vmem:[%s456_s6 + $0x18] sm:$0xff]  ;;  %390 = vmatpush.bf16.msra.mxu1 %v764_v1  ;;  %s215_s7 = scalar_select %p214_p11, %s926_s22, 1  ;;  %v768_v5 = vld [vmem:[%s456_s6 + $0x10] sm:$0xff]  ;;  %v767_v8 = vld [vmem:[%s456_s6 + $0x8] sm:$0xff] }
  0x21   : > { %496 = vmatpush.bf16.msra.mxu2 %v769_v2  ;;  %v761_v10 = vld [vmem:[%s350_s0] sm:$0xff]  ;;  %s680_s17 = sshll.u32 %s210_s16, 4  ;;  %s574_s25 = scalar_lea.hbm %s1203_s4, %s770_s18 }
  0x22   : > { %285 = vmatpush.bf16.msra.mxu0 %v758_v3  ;;  %s753_s8 = sshll.u32 %s215_s7, 3  ;;  %v766_v11 = vld [vmem:[%s456_s6] sm:$0xff]  ;;  %s771_s12 = smul.u32 12, %s215_s7 }
  0x23   : > { %s221_s11 = scalar_lea.vmem %s1200_s1, %s753_s8  ;;  %s212_s27 = scalar_lea.vmem [#allocation4], %s680_s17 }
  0x24   : > { %391 = vmatpush.bf16.msra.mxu1 %v763_v4  ;;  %v754_v12 = vld [vmem:[%s221_s11] sm:$0xff]  ;;  %s227_s15 = scalar_lea.vmem %s1202_s3, %s771_s12  ;;  %s575_s29 = sshll.u32 %s212_s27, 4  ;;  %s576_s29 = int_to_ptr.vmem [resolvable:$true] %s575_s29 }
  0x25   : > { %497 = vmatpush.bf16.msra.mxu2 %v768_v5  ;;  %v1040_v13 = vld [vmem:[%s227_s15] sm:$0x7]  ;;  %v1042_v14 = vld [vmem:[%s227_s15 + $0x4] sm:$0x7]  ;;  %v1050_v21 = vld [vmem:[%s227_s15 + $0x8] sm:$0x7] }
  0x26   : > { %286 = vmatpush.bf16.msra.mxu0 %v757_v6  ;;  %v246_v15 = vperm.slane %v1040_v13, 0  ;;  %v361_v16 = vperm.slane %v1042_v14, 0  ;;  %v467_v23 = vperm.slane %v1050_v21, 0  ;;  %s577_s6 = sshll.u32 %s574_s25, 4  ;;  %s561_s7 = scalar_lea.sflag [#allocation5], %s210_s16  ;;  %s578_s6 = int_to_ptr.hbm [resolvable:$true] %s577_s6 }
  0x27   : > { %s868_s8 = sshra.s32 %s578_s6, 4  ;;  %s874_s12 = scalar_lea.hbm %s1203_s4, 32  ;;  %s869_s8 = int_to_ptr.hbm [resolvable:$true] %s868_s8 }
  0x28   : > { %392 = vmatpush.bf16.msra.mxu1 %v762_v7  ;;  %s870_s9 = scalar_lea.hbm %s869_s8, 16  ;;  %p875_p1 = scmp.lt.s32.totalorder %s869_s8, %s1203_s4 }
  0x29   : > { %498 = vmatpush.bf16.msra.mxu2 %v767_v8  ;;  %p871_p12 = scmp.ne.s32.totalorder %s869_s8, %s870_s9  ;;  %p876_p2 = scmp.lt.s32.totalorder %s874_s12, %s870_s9 }
  0x2a   : > { %287 = vmatpush.bf16.msra.mxu0 %v756_v9 }
  0x2b   : > { %p872_p13 = pnand %p871_p12, %p1007_p4  ;;  %p877_p3 = por %p876_p2, %p875_p1 }
  0x2c   : > { %393 = vmatpush.bf16.msra.mxu1 %v761_v10 }
  0x2d   : > { %499 = vmatpush.bf16.msra.mxu2 %v766_v11  ;;  %707 = vmatmul.msk.bf16.vlgmr.msra.gmra.mxu0 %vm276_vm0, %v754_v12  ;;  %p873_p0 = pneg %p872_p13 }
  0x2f   : > { %727 = vmatmul.msk.bf16.vlgmr.msra.gmra.mxu1 %vm276_vm0, %v754_v12  ;;  %p878_p5 = pnand %p877_p3, %p873_p0 }
  0x30   : > { %747 = vmatmul.msk.bf16.vlgmr.msra.gmra.mxu2 %vm276_vm0, %v754_v12 }
  0xaa   : > { %v289_v17 = vpop.f32.mrf.mxu0 }
  0xab   : > { %v1046_v18 = vadd.f32 %v289_v17, %v246_v15 }
  0xac   : > { %v395_v19 = vpop.f32.mrf.mxu1 }
  0xad   : > { %v1048_v20 = vadd.f32 %v395_v19, %v361_v16  ;;  %294 = vadd.xlane.f32.xlu0 %v1046_v18  ;;  %v300_v22 = vmul.f32 %v1046_v18, %v1046_v18 }
  0xaf   : > { %400 = vadd.xlane.f32.xlu2 %v1048_v20  ;;  %302 = vadd.xlane.f32.xlu1 %v300_v22  ;;  %v406_v28 = vmul.f32 %v1048_v20, %v1048_v20 }
  0xb2   : > { %v291_v25 = vpop.f32.mrf.mxu0 }
  0xb3   : > { %v501_v24 = vpop.f32.mrf.mxu2  ;;  %v1059_v27 = vadd.f32 %v291_v25, %v246_v15 }
  0xb4   : > { %v1057_v26 = vadd.f32 %v501_v24, %v467_v23  ;;  %v397_v30 = vpop.f32.mrf.mxu1 }
  0xb5   : > { %408 = vadd.xlane.f32.xlu0 %v406_v28  ;;  %v301_v29 = vmul.f32 %v1059_v27, %v1059_v27  ;;  %v1066_v31 = vadd.f32 %v397_v30, %v361_v16 }
  0xb6   : > { %v512_v36 = vmul.f32 %v1057_v26, %v1057_v26 }
  0xb7   : > { %506 = vadd.xlane.f32.xlu2 %v1057_v26  ;;  %304 = vadd.xlane.f32.xlu1 %v301_v29  ;;  %v407_v33 = vmul.f32 %v1066_v31, %v1066_v31 }
  0xbb   : > { %v503_v32 = vpop.f32.mrf.mxu2 }
  0xbc   : > { %v1072_v34 = vadd.f32 %v503_v32, %v467_v23 }
  0xbd   : > { %296 = vadd.xlane.f32.xlu0 %v1059_v27 }
  0xbe   : > { %v513_v35 = vmul.f32 %v1072_v34, %v1072_v34 }
  0xbf   : > { %402 = vadd.xlane.f32.xlu2 %v1066_v31  ;;  %410 = vadd.xlane.f32.xlu1 %v407_v33 }
  0xc5   : > { %508 = vadd.xlane.f32.xlu0 %v1072_v34 }
  0xc7   : > { %516 = vadd.xlane.f32.xlu2 %v513_v35  ;;  %514 = vadd.xlane.f32.xlu1 %v512_v36 }
 0x120   : > { %v295_v37 = vpop.xlane.xlu0 %294 }
 0x121   : > { %v1079_v38 = vmul.f32 0.03125, %v295_v37 }
 0x122   : > { %v401_v39 = vpop.xlane.xlu2 %400  ;;  %v303_v40 = vpop.xlane.xlu1 %302 }
 0x123   : > { %v308_v41 = vmul.f32 %v1079_v38, %v1079_v38  ;;  %v306_v42 = vmul.f32 0.03125, %v303_v40  ;;  %v1083_v43 = vmul.f32 0.03125, %v401_v39 }
 0x125   : > { %v310_v44 = vsub.f32 %v306_v42, %v308_v41  ;;  %v414_v47 = vmul.f32 %v1083_v43, %v1083_v43 }
 0x127   : > { %v314_v45 = vadd.f32 1e-06, %v310_v44 }
 0x128   : > { %v409_v46 = vpop.xlane.xlu0 %408 }
 0x129   : > { %830 = vrsqrt.f32 %v314_v45  ;;  %v412_v48 = vmul.f32 0.03125, %v409_v46  ;;  %vm322_vm2 = vweird.f32 %v314_v45 }
 0x12a   : > { %v507_v49 = vpop.xlane.xlu2 %506  ;;  %v305_v50 = vpop.xlane.xlu1 %304 }
 0x12b   : > { %v416_v51 = vsub.f32 %v412_v48, %v414_v47  ;;  %v307_v60 = vmul.f32 0.03125, %v305_v50  ;;  %v1103_v7 = vmul.f32 0.03125, %v507_v49  ;;  %v338_v47 = vperm.slane %v1040_v13, 1 }
 0x12c   : > { %v312_v50 = vsub.f32 %v1046_v18, %v1079_v38 }
 0x12d   : > { %v420_v52 = vadd.f32 1e-06, %v416_v51  ;;  %v520_v22 = vmul.f32 %v1103_v7, %v1103_v7 }
 0x12f   : > { %v1087_v53 = vpop.eup %830  ;;  %832 = vrsqrt.f32 %v420_v52  ;;  %vm428_vm5 = vweird.f32 %v420_v52 }
 0x130   : > { %v297_v54 = vpop.xlane.xlu0 %296  ;;  %v317_v55 = vmul.f32 %v1087_v53, %v314_v45  ;;  %vm323_vm1 = vweird.f32 %v1087_v53  ;;  %v444_v45 = vperm.slane %v1042_v14, 1 }
 0x131   : > { %v1090_v56 = vmul.f32 0.03125, %v297_v54  ;;  %vm1121_vm4 = vmor %vm322_vm2, %vm323_vm1 }
 0x132   : > { %v403_v57 = vpop.xlane.xlu2 %402  ;;  %v411_v59 = vpop.xlane.xlu1 %410  ;;  %v318_v1 = vmul.f32 %v1087_v53, %v317_v55 }
 0x133   : > { %v1092_v58 = vmul.f32 0.03125, %v403_v57  ;;  %v309_v61 = vmul.f32 %v1090_v56, %v1090_v56  ;;  %v413_v62 = vmul.f32 0.03125, %v411_v59  ;;  %v418_v57 = vsub.f32 %v1048_v20, %v1083_v43 }
 0x134   : > { %v319_v10 = vmul.f32 0.5, %v318_v1  ;;  %v313_v38 = vsub.f32 %v1059_v27, %v1090_v56 }
 0x135   : > { %v415_v63 = vmul.f32 %v1092_v58, %v1092_v58  ;;  %v1098_v0 = vpop.eup %832  ;;  %v311_v2 = vsub.f32 %v307_v60, %v309_v61 }
 0x136   : > { %v423_v3 = vmul.f32 %v1098_v0, %v420_v52  ;;  %v320_v24 = vsub.f32 1.5, %v319_v10  ;;  %vm429_vm3 = vweird.f32 %v1098_v0 }
 0x137   : > { %v417_v4 = vsub.f32 %v413_v62, %v415_v63  ;;  %v315_v5 = vadd.f32 1e-06, %v311_v2  ;;  %vm1132_vm6 = vmor %vm428_vm5, %vm429_vm3 }
 0x138   : > { %v424_v6 = vmul.f32 %v1098_v0, %v423_v3  ;;  %v509_v9 = vpop.xlane.xlu0 %508  ;;  %v321_v37 = vmul.f32 %v1087_v53, %v320_v24  ;;  %v449_v24 = vperm.slane %v1042_v14, 2 }
 0x139   : > { %v421_v8 = vadd.f32 1e-06, %v417_v4  ;;  %834 = vrsqrt.f32 %v315_v5  ;;  %v1105_v11 = vmul.f32 0.03125, %v509_v9  ;;  %vm332_vm9 = vweird.f32 %v315_v5 }
 0x13a   : > { %v517_v12 = vpop.xlane.xlu2 %516  ;;  %v515_v15 = vpop.xlane.xlu1 %514  ;;  %v425_v16 = vmul.f32 0.5, %v424_v6  ;;  %v325_v48 = vsel %vm1121_vm4, %v1087_v53, %v321_v37 }
 0x13b   : > { %836 = vrsqrt.f32 %v421_v8  ;;  %v521_v17 = vmul.f32 %v1105_v11, %v1105_v11  ;;  %v519_v19 = vmul.f32 0.03125, %v517_v12  ;;  %v518_v23 = vmul.f32 0.03125, %v515_v15 }
 0x13c   : > { %v426_v30 = vsub.f32 1.5, %v425_v16  ;;  %v336_v60 = vmul.f32 %v325_v48, %v312_v50  ;;  %vm438_vm11 = vweird.f32 %v421_v8  ;;  %v550_v16 = vperm.slane %v1050_v21, 1 }
 0x13d   : > { %v523_v25 = vsub.f32 %v519_v19, %v521_v17  ;;  %v522_v28 = vsub.f32 %v518_v23, %v520_v22  ;;  %v525_v22 = vsub.f32 %v1072_v34, %v1105_v11  ;;  %v555_v11 = vperm.slane %v1050_v21, 2 }
 0x13e   : > { %v427_v41 = vmul.f32 %v1098_v0, %v426_v30  ;;  %v339_v6 = vmul.f32 %v338_v47, %v336_v60 }
 0x13f   : > { %v835_v29 = vpop.eup %834  ;;  %v1111_v32 = vadd.f32 1e-06, %v523_v25  ;;  %v1113_v36 = vadd.f32 1e-06, %v522_v28  ;;  %v524_v28 = vsub.f32 %v1057_v26, %v1103_v7 }
 0x140   : > { %v327_v35 = vmul.f32 %v835_v29, %v315_v5  ;;  %vm333_vm7 = vweird.f32 %v835_v29  ;;  %v431_v52 = vsel %vm1132_vm6, %v1098_v0, %v427_v41  ;;  %v419_v0 = vsub.f32 %v1066_v31, %v1092_v58 }
 0x141   : > { %v837_v33 = vpop.eup %836  ;;  %838 = vrsqrt.f32 %v1111_v32  ;;  %vm334_vm10 = vmor %vm332_vm9, %vm333_vm7  ;;  %v442_v43 = vmul.f32 %v431_v52, %v418_v57  ;;  %v343_v5 = vperm.slane %v1040_v13, 2  ;;  %vm544_vm15 = vweird.f32 %v1111_v32 }
 0x142   : > { %v433_v39 = vmul.f32 %v837_v33, %v421_v8  ;;  %v328_v40 = vmul.f32 %v835_v29, %v327_v35  ;;  %840 = vrsqrt.f32 %v1113_v36  ;;  %vm439_vm8 = vweird.f32 %v837_v33 }
 0x143   : > { %vm440_vm12 = vmor %vm438_vm11, %vm439_vm8  ;;  %v445_v10 = vmul.f32 %v444_v45, %v442_v43  ;;  %v344_v17 = vadd.f32 %v343_v5, %v339_v6  ;;  %vm534_vm1 = vweird.f32 %v1113_v36 }
 0x144   : > { %v434_v42 = vmul.f32 %v837_v33, %v433_v39  ;;  %v329_v46 = vmul.f32 0.5, %v328_v40 }
 0x145   : > { %v447_v25 = vadd.f32 %v445_v10, %v344_v17 }
 0x146   : > { %v435_v49 = vmul.f32 0.5, %v434_v42  ;;  %v330_v54 = vsub.f32 1.5, %v329_v46 }
 0x147   : > { %v839_v55 = vpop.eup %838  ;;  %v450_v14 = vadd.f32 %v449_v24, %v447_v25 }
 0x148   : > { %v436_v53 = vsub.f32 1.5, %v435_v49  ;;  %v841_v59 = vpop.eup %840  ;;  %v331_v61 = vmul.f32 %v835_v29, %v330_v54  ;;  %v539_v18 = vmul.f32 %v839_v55, %v1111_v32  ;;  %vm545_vm13 = vweird.f32 %v839_v55 }
 0x149   : > { %v529_v20 = vmul.f32 %v841_v59, %v1113_v36  ;;  %vm535_vm14 = vweird.f32 %v841_v59  ;;  %vm546_vm0 = vmor %vm544_vm15, %vm545_vm13 }
 0x14a   : > { %v437_v62 = vmul.f32 %v837_v33, %v436_v53  ;;  %v335_v63 = vsel %vm334_vm10, %v835_v29, %v331_v61  ;;  %v540_v1 = vmul.f32 %v839_v55, %v539_v18  ;;  %vm536_vm2 = vmor %vm534_vm1, %vm535_vm14 }
 0x14b   : > { %v337_v2 = vmul.f32 %v335_v63, %v313_v38  ;;  %v530_v4 = vmul.f32 %v841_v59, %v529_v20 }
 0x14c   : > { %v441_v3 = vsel %vm440_vm12, %v837_v33, %v437_v62  ;;  %v541_v56 = vmul.f32 0.5, %v540_v1 }
 0x14d   : > { %v443_v27 = vmul.f32 %v441_v3, %v419_v0  ;;  %v340_v8 = vmul.f32 %v338_v47, %v337_v2  ;;  %v531_v9 = vmul.f32 0.5, %v530_v4 }
 0x14e   : > { %v542_v15 = vsub.f32 1.5, %v541_v56 }
 0x14f   : > { %v446_v12 = vmul.f32 %v444_v45, %v443_v27  ;;  %v345_v31 = vadd.f32 %v343_v5, %v340_v8  ;;  %v532_v58 = vsub.f32 1.5, %v531_v9 }
 0x150   : > { %v543_v19 = vmul.f32 %v839_v55, %v542_v15 }
 0x151   : > { %v448_v13 = vadd.f32 %v446_v12, %v345_v31  ;;  %v533_v23 = vmul.f32 %v841_v59, %v532_v58 }
 0x152   : > { %v547_v29 = vsel %vm546_vm0, %v839_v55, %v543_v19 }
 0x153   : > { %v549_v30 = vmul.f32 %v547_v29, %v525_v22  ;;  %v537_v32 = vsel %vm536_vm2, %v841_v59, %v533_v23  ;;  %v451_v33 = vadd.f32 %v449_v24, %v448_v13 }
 0x154   : > { %v548_v34 = vmul.f32 %v537_v32, %v524_v28 }
 0x155   : > { %v552_v35 = vmul.f32 %v550_v16, %v549_v30 }
 0x156   : > { %v551_v36 = vmul.f32 %v550_v16, %v548_v34 }
 0x157   : > { %v554_v26 = vadd.f32 %v552_v35, %v451_v33 }
 0x158   : > { %v553_v7 = vadd.f32 %v551_v36, %v450_v14 }
 0x159   : > { %v557_v37 = vadd.f32 %v555_v11, %v554_v26 }
 0x15a   : > { %v556_v39 = vadd.f32 %v555_v11, %v553_v7 }
 0x15b   : > { %559 = vst [vmem:[%s212_s27 + $0x8] sm:$0xff] %v557_v37 }
 0x15c   : > { %558 = vst [vmem:[%s212_s27] sm:$0xff] %v556_v39 }
 0x15d   : > { %881 = shalt.err (!%p878_p5)
}
 0x15e   : > { %s937_s15 = smov 128   ;;  %s938_s16 = smov 8  }
 0x15f   : > { %772 = dma.vmem_to_hbm [thread:$0]  (%p1007_p4), %s576_s29, 256, %s578_s6, %s561_s7, %s937_s15, %s937_s15, %s938_s16  }
 0x160 PF: > { %p778_p6 = scmp.ge.s32.totalorder %s934_s24, 2  ;;  %s592_s17 = sand.u32 1, %s914_s19  }
 0x161   : > { %s593_s18 = scalar_lea.sflag [#allocation5], %s592_s17 }
 0x162   : > { %p775_p7 = pnand %p778_p6, %p1014_p8 }
 0x164   : > { %p776_p9 = pneg %p775_p7 }
 0x166   : > { %909 = dma.done.wait (%p776_p9), %s593_s18, 256  }
 0x167   : > { %911 = vsyncadd (%p776_p9), %s593_s18, 4294967040  ;;  %s25_s24 = sadd.s32 1, %s934_s24   ;;  %s1210_s19 = smov %s918_s20 }
 0x168   : > { %p22_p10 = scmp.ge.s32.totalorder %s25_s24, 4   ;;  %s1211_s20 = smov %s922_s21 }
 0x169   : > { %s1212_s21 = smov %s1020_s5  ;;  %s1213_s22 = smov %s930_s23 }
 0x16a   : > { %s1214_s23 = smov %s1216_s26  ;;  %24 = sbr.rel (!%p22_p10) target bundleno = 10 (0xa), region = 75 }
 0x16f   :  { %599 = vsyncpa [#allocation5], 1 }
 0x170   :  { %601 = vsyncpa [#allocation5 + $0x1], 1 }

</bundles_post_ra>
